<compile_context>
chip_gen: v7x
topology: tpu7x:2x2x1
jax: 0.10.0
libtpu: 0.0.40
codegen_flags: <defaults>
</compile_context>

<pallas_src>
import jax
import jax.numpy as jnp
from jax.experimental import pallas as pl
from jax.experimental.pallas import tpu as pltpu


IN_DIM = 9 * 13   # 117
HID = 4
OUT_DIM = 5
MAX_TB = 8192     # batch-tile rows (multiple of 8); ~3.7 MiB f32 per x buffer


def _round_up(x, m):
    return ((x + m - 1) // m) * m


def _mlp_kernel(x_ref, w1_ref, b1_ref, w2_ref, b2_ref, o_ref):
    # x_ref: (TB, 117) f32, w1_ref: (117, 4) f32, b1_ref: (1, 4) f32,
    # w2_ref: (4, 5) f32,  b2_ref: (1, 5) f32,   o_ref: (TB, 5) f32
    x = x_ref[...]
    # fc1: f32 MXU matmul with f32 accumulation + bias.
    h = jnp.dot(x, w1_ref[...], preferred_element_type=jnp.float32) + b1_ref[...]
    # ReLU
    h = jnp.maximum(h, 0.0)
    # fc2
    y = jnp.dot(h, w2_ref[...], preferred_element_type=jnp.float32) + b2_ref[...]
    o_ref[...] = y.astype(o_ref.dtype)


def simple_model_forward(x, w1, b1, w2, b2):
    """x: (B, 9, 13) float32. Returns (B, 5) float32."""
    B = x.shape[0]
    in_dim = IN_DIM
    hid = w1.shape[1]
    out_dim = w2.shape[1]

    # Flatten only (nn.Flatten on a contiguous tensor). No cast, no pad: the
    # kernel reads f32 directly and Pallas masks the ragged last batch block.
    x_flat = x.reshape(B, in_dim)

    w1_f32 = w1.astype(jnp.float32)
    w2_f32 = w2.astype(jnp.float32)
    b1_f32 = b1.astype(jnp.float32)
    b2_f32 = b2.astype(jnp.float32)

    # Batch tile: multiple of 8 (f32 packs 8 rows / vreg), capped at MAX_TB.
    tb = min(MAX_TB, _round_up(B, 8))
    num_blocks = pl.cdiv(B, tb)

    # Honest cost estimate: real B rows, f32 x bytes.
    bytes_accessed = (B * (in_dim * 4 + out_dim * 4)          # x read + y write (f32)
                      + (in_dim * hid + hid * out_dim) * 4     # weights (f32)
                      + (hid + out_dim) * 4)                   # biases (f32)
    flops = 2 * B * (in_dim * hid + hid * out_dim)

    out = pl.pallas_call(
        _mlp_kernel,
        out_shape=jax.ShapeDtypeStruct((B, out_dim), jnp.float32),
        grid=(num_blocks,),
        in_specs=[
            pl.BlockSpec((tb, in_dim), lambda i: (i, 0)),       # x: tiled over batch
            pl.BlockSpec((in_dim, hid), lambda i: (0, 0)),      # w1: VMEM-resident
            pl.BlockSpec((1, hid), lambda i: (0, 0)),           # b1: VMEM-resident
            pl.BlockSpec((hid, out_dim), lambda i: (0, 0)),     # w2: VMEM-resident
            pl.BlockSpec((1, out_dim), lambda i: (0, 0)),       # b2: VMEM-resident
        ],
        out_specs=pl.BlockSpec((tb, out_dim), lambda i: (i, 0)),
        compiler_params=pltpu.CompilerParams(
            dimension_semantics=("parallel",),   # batch rows independent -> megacore OK
        ),
        cost_estimate=pl.CostEstimate(
            flops=flops,
            transcendentals=0,
            bytes_accessed=bytes_accessed,
        ),
    )(x_flat, w1_f32, b1_f32, w2_f32, b2_f32)

    return out


def init_params(key):
    """Deterministic parameter init mirroring nn.Linear shapes.

    fc1: weight (4, 117), bias (4,)   -> stored as w1 (117, 4), b1 (1, 4)
    fc2: weight (5, 4),   bias (5,)   -> stored as w2 (4, 5),   b2 (1, 5)
    """
    k1, k2, k3, k4 = jax.random.split(key, 4)
    lim1 = 1.0 / jnp.sqrt(IN_DIM)
    lim2 = 1.0 / jnp.sqrt(HID)
    w1 = jax.random.uniform(k1, (IN_DIM, HID), jnp.float32, -lim1, lim1)
    b1 = jax.random.uniform(k2, (1, HID), jnp.float32, -lim1, lim1)
    w2 = jax.random.uniform(k3, (HID, OUT_DIM), jnp.float32, -lim2, lim2)
    b2 = jax.random.uniform(k4, (1, OUT_DIM), jnp.float32, -lim2, lim2)
    return w1, b1, w2, b2


if __name__ == "__main__":
    key = jax.random.PRNGKey(0)
    kx, kp = jax.random.split(key)

    # Small input consistent with fc1's expected 9*13 = 117 flattened features.
    B = 2
    x = jax.random.normal(kx, (B, 9, 13), jnp.float32)
    w1, b1, w2, b2 = init_params(kp)

    out = simple_model_forward(x, w1, b1, w2, b2)
    out = jax.block_until_ready(out)

    # Pure-f32 reference in plain JAX (highest precision to match the f32 math).
    xf = x.reshape(B, -1)
    h_ref = jnp.maximum(
        jnp.dot(xf, w1, precision=jax.lax.Precision.HIGHEST) + b1, 0.0)
    ref = jnp.dot(h_ref, w2, precision=jax.lax.Precision.HIGHEST) + b2

    assert out.shape == (B, 5)
    assert bool(jnp.all(jnp.isfinite(out)))
    assert jnp.allclose(out, ref, atol=2e-3, rtol=2e-3)

    print("KERNEL_OK")
</pallas_src>

<mosaic_0001>
module attributes {stable_mosaic.version = 11 : i64} {
  func.func @_mlp_kernel(%arg0: i32, %arg1: memref<8x117xf32, #tpu.memory_space<vmem>>, %arg2: memref<117x4xf32, #tpu.memory_space<vmem>>, %arg3: memref<1x4xf32, #tpu.memory_space<vmem>>, %arg4: memref<4x5xf32, #tpu.memory_space<vmem>>, %arg5: memref<1x5xf32, #tpu.memory_space<vmem>>, %arg6: memref<8x5xf32, #tpu.memory_space<vmem>>) attributes {dimension_semantics = [#tpu.dimension_semantics<parallel>], iteration_bounds = array<i64: 1>, scalar_prefetch = 0 : i64, scratch_operands = 0 : i64, tpu.core_type = #tpu.core_type<tc>, window_params = [{transform_indices = @transform_0, window_bounds = array<i64: 8, 117>}, {pipeline_mode = #tpu.pipeline_mode<synchronous>, transform_indices = @transform_1, window_bounds = array<i64: 117, 4>}, {pipeline_mode = #tpu.pipeline_mode<synchronous>, transform_indices = @transform_2, window_bounds = array<i64: 1, 4>}, {pipeline_mode = #tpu.pipeline_mode<synchronous>, transform_indices = @transform_3, window_bounds = array<i64: 4, 5>}, {pipeline_mode = #tpu.pipeline_mode<synchronous>, transform_indices = @transform_4, window_bounds = array<i64: 1, 5>}, {transform_indices = @transform_5, window_bounds = array<i64: 8, 5>}]} {
    %c0 = arith.constant 0 : index
    %c0_0 = arith.constant 0 : index
    %0 = vector.load %arg1[%c0, %c0_0] : memref<8x117xf32, #tpu.memory_space<vmem>>, vector<8x117xf32>
    %c0_1 = arith.constant 0 : index
    %c0_2 = arith.constant 0 : index
    %1 = vector.load %arg2[%c0_1, %c0_2] : memref<117x4xf32, #tpu.memory_space<vmem>>, vector<117x4xf32>
    %cst = arith.constant dense<0.000000e+00> : vector<8x4xf32>
    %2 = tpu.matmul %0, %1, %cst {dimension_numbers = #tpu.dot_dimension_numbers<[1], [0], [0], [1], [0, 0, 1, 1], [], []>} : vector<8x117xf32>, vector<117x4xf32>, vector<8x4xf32> -> vector<8x4xf32>
    %c0_3 = arith.constant 0 : index
    %c0_4 = arith.constant 0 : index
    %3 = vector.load %arg3[%c0_3, %c0_4] : memref<1x4xf32, #tpu.memory_space<vmem>>, vector<1x4xf32>
    %4 = vector.broadcast %3 : vector<1x4xf32> to vector<8x4xf32>
    %5 = arith.addf %2, %4 : vector<8x4xf32>
    %cst_5 = arith.constant 0.000000e+00 : f32
    %6 = vector.broadcast %cst_5 : f32 to vector<8x4xf32>
    %7 = arith.maximumf %5, %6 : vector<8x4xf32>
    %c0_6 = arith.constant 0 : index
    %c0_7 = arith.constant 0 : index
    %8 = vector.load %arg4[%c0_6, %c0_7] : memref<4x5xf32, #tpu.memory_space<vmem>>, vector<4x5xf32>
    %cst_8 = arith.constant dense<0.000000e+00> : vector<8x5xf32>
    %9 = tpu.matmul %7, %8, %cst_8 {dimension_numbers = #tpu.dot_dimension_numbers<[1], [0], [0], [1], [0, 0, 1, 1], [], []>} : vector<8x4xf32>, vector<4x5xf32>, vector<8x5xf32> -> vector<8x5xf32>
    %c0_9 = arith.constant 0 : index
    %c0_10 = arith.constant 0 : index
    %10 = vector.load %arg5[%c0_9, %c0_10] : memref<1x5xf32, #tpu.memory_space<vmem>>, vector<1x5xf32>
    %11 = vector.broadcast %10 : vector<1x5xf32> to vector<8x5xf32>
    %12 = arith.addf %9, %11 : vector<8x5xf32>
    %c0_11 = arith.constant 0 : index
    %c0_12 = arith.constant 0 : index
    %13 = vector.load %arg6[%c0_11, %c0_12] : memref<8x5xf32, #tpu.memory_space<vmem>>, vector<8x5xf32>
    tpu.vector_store %arg6[%c0_11, %c0_12], %12 {strides = array<i32>} : memref<8x5xf32, #tpu.memory_space<vmem>>, vector<8x5xf32>,
    return
  }
  func.func @transform_0(%arg0: i32) -> (i32, i32) {
    %c0_i32 = arith.constant 0 : i32
    %c0_i32_0 = arith.constant 0 : i32
    return %arg0, %c0_i32 : i32, i32
  }
  func.func @transform_1(%arg0: i32) -> (i32, i32) {
    %c0_i32 = arith.constant 0 : i32
    %c0_i32_0 = arith.constant 0 : i32
    %c0_i32_1 = arith.constant 0 : i32
    return %c0_i32, %c0_i32_0 : i32, i32
  }
  func.func @transform_2(%arg0: i32) -> (i32, i32) {
    %c0_i32 = arith.constant 0 : i32
    %c0_i32_0 = arith.constant 0 : i32
    %c0_i32_1 = arith.constant 0 : i32
    return %c0_i32, %c0_i32_0 : i32, i32
  }
  func.func @transform_3(%arg0: i32) -> (i32, i32) {
    %c0_i32 = arith.constant 0 : i32
    %c0_i32_0 = arith.constant 0 : i32
    %c0_i32_1 = arith.constant 0 : i32
    return %c0_i32, %c0_i32_0 : i32, i32
  }
  func.func @transform_4(%arg0: i32) -> (i32, i32) {
    %c0_i32 = arith.constant 0 : i32
    %c0_i32_0 = arith.constant 0 : i32
    %c0_i32_1 = arith.constant 0 : i32
    return %c0_i32, %c0_i32_0 : i32, i32
  }
  func.func @transform_5(%arg0: i32) -> (i32, i32) {
    %c0_i32 = arith.constant 0 : i32
    %c0_i32_0 = arith.constant 0 : i32
    return %arg0, %c0_i32 : i32, i32
  }
}

</mosaic_0001>

<bundles_post_ra>
// kernel: tpu_custom_call.1
= control target key start
LH: loop header
LB: loop body
LE: loop exit
PB: predicated region body
PF: predicated region fallthrough
CT: control target
= control target key end

     0   :  { %10 = vsyncpa [#allocation3], 0  ;;  %v340_v2 = vmov 0.0|0.0   ;;  %v341_v6 = vmov 0.0   ;;  %vm342_vm0 = vmmov 0   ;;  %vm48_vm1 = vcmask 1044480   ;;  %s445_s0 = inlined_call_operand.vmem [shape: f32[2,117], index: 0, kind: input, shape index: {}]   ;;  %s446_s1 = inlined_call_operand.vmem [shape: f32[117,4], index: 1, kind: input, shape index: {}]   ;;  %s447_s2 = inlined_call_operand.vmem [shape: f32[1,4], index: 2, kind: input, shape index: {}]   ;;  %s448_s3 = inlined_call_operand.vmem [shape: f32[4,5], index: 3, kind: input, shape index: {}]   ;;  %s449_s4 = inlined_call_operand.vmem [shape: f32[1,5], index: 4, kind: input, shape index: {}]   ;;  %s450_s5 = inlined_call_operand.hbm [shape: f32[2,5], index: 5, kind: output, shape index: {}]  }
   0x1   :  { %v22_v0 = vld [vmem:[%s446_s1] sm:$0xff]  ;;  %v23_v1 = vld [vmem:[%s446_s1 + $0x8] sm:$0xff]  ;;  %289 = vmatprep.subr.bf16.mxu0 %v340_v2  ;;  %v24_v4 = vld [vmem:[%s446_s1 + $0x10] sm:$0xff]  ;;  %284 = vmatprep.subr.mxu1 %v341_v6  ;;  %vm44_vm2 = vcmask 957440   ;;  %vm135_vm3 = vcmask 1043456   ;;  %vm131_vm4 = vcmask 31744  }
   0x2   :  { %v290_v3 = vpack.c.bf16 %v23_v1, %v22_v0  ;;  %v25_v5 = vld [vmem:[%s446_s1 + $0x18] sm:$0xff]  ;;  %281 = vmatprep.mubr.msk.f32.mxu0 %vm342_vm0, %v341_v6  ;;  %286 = vmatprep.mubr.msk.f32.mxu1 %vm342_vm0, %v341_v6  ;;  %v26_v8 = vld [vmem:[%s446_s1 + $0x20] sm:$0xff]  ;;  %v27_v9 = vld [vmem:[%s446_s1 + $0x28] sm:$0xff]  ;;  %vm209_vm5 = vcmask 39936  }
   0x3   :  { %v293_v7 = vpack.c.bf16 %v25_v5, %v24_v4  ;;  %v296_v10 = vpack.c.bf16 %v27_v9, %v26_v8  ;;  %v28_v11 = vld [vmem:[%s446_s1 + $0x30] sm:$0xff]  ;;  %v29_v12 = vld [vmem:[%s446_s1 + $0x38] sm:$0xff]  ;;  %v30_v14 = vld [vmem:[%s446_s1 + $0x40] sm:$0xff] }
   0x4   :  { %291 = vmatpush3.bf16.msra.mxu0 %v290_v3  ;;  %v299_v13 = vpack.c.bf16 %v29_v12, %v28_v11  ;;  %v31_v15 = vld [vmem:[%s446_s1 + $0x48] sm:$0xff]  ;;  %v32_v17 = vld [vmem:[%s446_s1 + $0x50] sm:$0xff]  ;;  %v33_v18 = vld [vmem:[%s446_s1 + $0x58] sm:$0xff] }
   0x5   :  { %292 = vmatprep.subr.bf16.mxu0 %v340_v2  ;;  %v302_v16 = vpack.c.bf16 %v31_v15, %v30_v14  ;;  %v305_v19 = vpack.c.bf16 %v33_v18, %v32_v17  ;;  %v34_v20 = vld [vmem:[%s446_s1 + $0x60] sm:$0xff]  ;;  %v35_v21 = vld [vmem:[%s446_s1 + $0x68] sm:$0xff]  ;;  %v36_v23 = vld [vmem:[%s446_s1 + $0x70] sm:$0x1f] }
   0x6   :  { %v308_v22 = vpack.c.bf16 %v35_v21, %v34_v20  ;;  %v21_v24 = vld [vmem:[%s445_s0] sm:$0xff] }
   0x7   :  { %v123_v25 = vld [vmem:[%s448_s3] sm:$0xf] }
   0x8   :  { %294 = vmatpush3.bf16.msra.mxu0 %v293_v7  ;;  %285 = vmatpush3.msk.msra.mxu1 %vm135_vm3, %v123_v25  ;;  %v227_v26 = vld [vmem:[%s447_s2] ss:$0 sm:$0xff] }
   0x9   :  { %295 = vmatprep.subr.bf16.mxu0 %v340_v2  ;;  %v230_v31 = vld [vmem:[%s449_s4] ss:$0 sm:$0xff] }
   0xc   :  { %297 = vmatpush3.bf16.msra.mxu0 %v296_v10 }
   0xd   :  { %298 = vmatprep.subr.bf16.mxu0 %v340_v2 }
  0x10   :  { %300 = vmatpush3.bf16.msra.mxu0 %v299_v13 }
  0x11   :  { %301 = vmatprep.subr.bf16.mxu0 %v340_v2 }
  0x14   :  { %303 = vmatpush3.bf16.msra.mxu0 %v302_v16 }
  0x15   :  { %304 = vmatprep.subr.bf16.mxu0 %v340_v2 }
  0x18   :  { %306 = vmatpush3.bf16.msra.mxu0 %v305_v19 }
  0x19   :  { %307 = vmatprep.subr.bf16.mxu0 %v340_v2 }
  0x1c   :  { %309 = vmatpush3.bf16.msra.mxu0 %v308_v22 }
  0x1d   :  { %279 = vmatprep.subr.mxu0 %v341_v6 }
  0x20   :  { %280 = vmatpush3.msk.msra.mxu0 %vm48_vm1, %v36_v23 }
  0x21   :  { %282 = vmatmul.mubr.msk.f32.vlgmr.msra.gmra.mrb[0].mxu0 %vm44_vm2, %v21_v24 }
  0xf4   :  { %v118_v27 = vpop.f32.mrb[0].mxu0 }
  0xf5   :  { %v119_v28 = vadd.f32 %v227_v26, %v118_v27  ;;  %v283_v29 = vpop.f32.mrb[1].mxu0 }
  0xf7   :  { %v122_v30 = vmax.f32 %v119_v28, 0.0 }
  0xf9   :  { %287 = vmatmul.mubr.msk.f32.vlgmr.msra.gmra.mrb[0].mxu1 %vm131_vm4, %v122_v30 }
 0x1cc   :  { %v205_v32 = vpop.f32.mrb[0].mxu1 }
 0x1cd   :  { %v206_v33 = vadd.f32 %v230_v31, %v205_v32  ;;  %v288_v34 = vpop.f32.mrb[1].mxu1 }
 0x1cf   :  { %210 = vst.msk [vmem:[#allocation2] sm:$0xff] %vm209_vm5, %v206_v33 }
 0x1d0   :  { %215 = vsyncadd [#allocation3], 96  ;;  %s343_s3 = smov [#allocation2]  }
 0x1d1   :  { %s216_s29 = sshll.u32 %s343_s3, 4  ;;  %s217_s29 = int_to_ptr.vmem [resolvable:$true] %s216_s29 }
 0x1d2   :  { %s316_s2 = scalar_lea.vmem %s217_s29, 32  ;;  %s320_s30 = scalar_lea.vmem %s217_s29, 128 }
 0x1d3   :  { %p317_p0 = scmp.ne.s32.totalorder %s217_s29, %s316_s2  ;;  %p321_p1 = scmp.lt.s32.totalorder %s217_s29, %s217_s29 }
 0x1d4   :  { %p322_p2 = scmp.lt.s32.totalorder %s320_s30, %s316_s2 }
 0x1d6   :  { %p323_p3 = por %p322_p2, %p321_p1 }
 0x1d8   :  { %p324_p4 = pnand %p323_p3, %p317_p0 }
 0x1da   :  { %327 = shalt.err (!%p324_p4)
}
 0x1db   :  { %s328_s4 = scalar_lea.hbm %s450_s5, 32 }
 0x1dc   :  { %p329_p5 = scmp.ne.s32.totalorder %s450_s5, %s328_s4  ;;  %p332_p6 = scmp.lt.u32.totalorder %s328_s4, %s450_s5 }
 0x1de   :  { %p334_p7 = pnand %p332_p6, %p329_p5 }
 0x1e0   :  { %337 = shalt.err (!%p334_p7)
}
 0x1e1   :  { %s344_s12 = smov 32   ;;  %s345_s13 = smov 2  }
 0x1e2   :  { %222 = dma.vmem_to_hbm [thread:$0]  %s217_s29, 32, %s450_s5, [#allocation3], %s344_s12, %s344_s12, %s345_s13  }
 0x1e3   :  { %338 = dma.done.wait [#allocation3], 128  }
 0x1e4   :  { %339 = vsyncadd [#allocation3], 4294967168 }
 0x1e5   :  { %226 = vsyncpa [#allocation3], 1 }

</bundles_post_ra>
